<compile_context>
chip_gen: v6e
topology: v6e:2x2x1
jax: 0.10.0
libtpu: 0.0.40
codegen_flags: <defaults>
</compile_context>

<pallas_src>
import math
import functools

import jax
import jax.numpy as jnp
from jax import lax
from jax.experimental import pallas as pl
from jax.experimental.pallas import tpu as pltpu


def _round_up(x: int, m: int) -> int:
    return (x + m - 1) // m * m


def _embed_kernel(ids_ref, emb_ref, o_ref, *, scale: float):
    """One tile of tokens: one-hot MXU gather of embedding rows, scale fused.

    ids_ref : VMEM (T, 1) int32    -- token ids for this tile
    emb_ref : VMEM (V_pad, D_pad)  -- full padded table; constant block index
                                      => DMA'd HBM->VMEM once, resident.
    o_ref   : VMEM (T, D_pad)      -- lane-dense output tile
    """
    ids = ids_ref[...]                                    # (T, 1)
    t = ids.shape[0]
    v_pad = emb_ref.shape[0]

    # One-hot selector (VPU iota + compare); the gather itself is a dense MXU
    # matmul instead of a serial per-row copy loop.
    iota = lax.broadcasted_iota(jnp.int32, (t, v_pad), 1)
    onehot = (iota == ids).astype(emb_ref.dtype)          # (T, V_pad)

    acc = jnp.dot(onehot, emb_ref[...], preferred_element_type=jnp.float32)
    # sqrt(d_model) fused into the f32 accumulator before the downcast:
    # no second full-tile read/write pass.
    o_ref[...] = (acc * jnp.float32(scale)).astype(o_ref.dtype)


def input_embeddings(tokens, emb_table, *, token_block=None):
    """tokens: (B, S) int; emb_table: (vocab, d_model). Returns (B, S, d_model)."""
    B, S = tokens.shape
    V, D = emb_table.shape
    N = B * S

    # Lane-dense padding: output last dim multiple of 128; vocab padded to 128
    # so the one-hot lane axis / MXU contraction dim is dense too.
    D_pad = _round_up(D, 128)
    V_pad = _round_up(V, 128)

    # Tile of token rows: big enough to amortize the ~0.35 us per-grid-step
    # overhead, small enough that the (token_block, V_pad) one-hot intermediate
    # stays ~<=2 MiB and the output tile double-buffer is cheap.
    if token_block is None:
        token_block = max(8, min(1024, ((2 << 20) // (V_pad * 4)) // 8 * 8))
    token_block = max(8, _round_up(min(token_block, _round_up(N, 8)), 8))

    n_pad = _round_up(N, token_block)
    ids = tokens.reshape(N).astype(jnp.int32)
    if n_pad != N:
        # Pad with token 0; padded rows are sliced off below.
        ids = jnp.concatenate([ids, jnp.zeros((n_pad - N,), jnp.int32)])
    ids = ids.reshape(n_pad, 1)

    emb_p = emb_table
    if (V_pad, D_pad) != (V, D):
        emb_p = jnp.pad(emb_table, ((0, V_pad - V), (0, D_pad - D)))

    grid = (n_pad // token_block,)
    scale = math.sqrt(D)
    itemsize = jnp.dtype(emb_table.dtype).itemsize

    # Explicit VMEM budget: 2x resident table (default double-buffering),
    # 2x output tile, 2x ids tile, plus one-hot / f32-accumulator temporaries
    # and generous headroom.  Capped below v7x's 64 MiB/TC.
    table_bytes = V_pad * D_pad * itemsize
    out_tile_bytes = token_block * D_pad * itemsize
    ids_tile_bytes = token_block * 4
    interm_bytes = token_block * V_pad * 4 + token_block * D_pad * 4
    needed = 2 * table_bytes + 2 * out_tile_bytes + 2 * ids_tile_bytes + interm_bytes
    vmem_limit = int(min(64 << 20, needed + (16 << 20)))

    kernel = functools.partial(_embed_kernel, scale=scale)

    out = pl.pallas_call(
        kernel,
        out_shape=jax.ShapeDtypeStruct((n_pad, D_pad), emb_table.dtype),
        grid=grid,
        in_specs=[
            # Per-tile column of token ids (lane dim == full array dim of 1).
            pl.BlockSpec((token_block, 1), lambda i: (i, 0)),
            # Whole padded table, constant block index => DMA'd once, resident.
            pl.BlockSpec((V_pad, D_pad), lambda i: (0, 0)),
        ],
        out_specs=pl.BlockSpec((token_block, D_pad), lambda i: (i, 0)),
        compiler_params=pltpu.CompilerParams(
            dimension_semantics=("parallel",),
            vmem_limit_bytes=vmem_limit,
        ),
    )(ids, emb_p)

    return out[:N, :D].reshape(B, S, D)


if __name__ == "__main__":
    # Small shapes consistent with the module: batch=2, seq=8, d_model=32.
    B, S = 2, 8
    d_model, vocab_size = 32, 1000

    key = jax.random.PRNGKey(0)
    k_tok, k_emb = jax.random.split(key)
    tokens = jax.random.randint(k_tok, (B, S), 0, vocab_size, dtype=jnp.int32)
    # nn.Embedding default init ~ N(0, 1).
    emb_table = jax.random.normal(k_emb, (vocab_size, d_model), dtype=jnp.float32)

    y = input_embeddings(tokens, emb_table)
    y = jax.block_until_ready(y)

    y_ref = emb_table[tokens] * math.sqrt(d_model)
    assert y.shape == (B, S, d_model)
    assert jnp.allclose(y, y_ref, atol=1e-5, rtol=1e-5), "mismatch vs reference"

    print("KERNEL_OK")
</pallas_src>

<mosaic_0001>
module attributes {stable_mosaic.version = 11 : i64} {
  func.func @_embed_kernel(%arg0: i32, %arg1: memref<16x1xi32, #tpu.memory_space<vmem>>, %arg2: memref<1024x128xf32, #tpu.memory_space<vmem>>, %arg3: memref<16x128xf32, #tpu.memory_space<vmem>>) attributes {dimension_semantics = [#tpu.dimension_semantics<parallel>], iteration_bounds = array<i64: 1>, scalar_prefetch = 0 : i64, scratch_operands = 0 : i64, tpu.core_type = #tpu.core_type<tc>, window_params = [{transform_indices = @transform_0, window_bounds = array<i64: 16, 1>}, {pipeline_mode = #tpu.pipeline_mode<synchronous>, transform_indices = @transform_1, window_bounds = array<i64: 1024, 128>}, {transform_indices = @transform_2, window_bounds = array<i64: 16, 128>}]} {
    %c0 = arith.constant 0 : index
    %c0_0 = arith.constant 0 : index
    %0 = vector.load %arg1[%c0, %c0_0] : memref<16x1xi32, #tpu.memory_space<vmem>>, vector<16x1xi32>
    %1 = tpu.iota {dimensions = array<i32: 1>} : vector<16x1024xi32>
    %2 = vector.broadcast %0 : vector<16x1xi32> to vector<16x1024xi32>
    %3 = arith.cmpi eq, %1, %2 : vector<16x1024xi32>
    %4 = arith.extui %3 : vector<16x1024xi1> to vector<16x1024xi32>
    %5 = arith.sitofp %4 : vector<16x1024xi32> to vector<16x1024xf32>
    %c0_1 = arith.constant 0 : index
    %c0_2 = arith.constant 0 : index
    %6 = vector.load %arg2[%c0_1, %c0_2] : memref<1024x128xf32, #tpu.memory_space<vmem>>, vector<1024x128xf32>
    %cst = arith.constant dense<0.000000e+00> : vector<16x128xf32>
    %7 = tpu.matmul %5, %6, %cst {dimension_numbers = #tpu.dot_dimension_numbers<[1], [0], [0], [1], [0, 0, 1, 1], [], []>} : vector<16x1024xf32>, vector<1024x128xf32>, vector<16x128xf32> -> vector<16x128xf32>
    %cst_3 = arith.constant 5.65685415 : f32
    %8 = vector.broadcast %cst_3 : f32 to vector<16x128xf32>
    %9 = arith.mulf %7, %8 : vector<16x128xf32>
    %c0_4 = arith.constant 0 : index
    %c0_5 = arith.constant 0 : index
    %10 = vector.load %arg3[%c0_4, %c0_5] : memref<16x128xf32, #tpu.memory_space<vmem>>, vector<16x128xf32>
    tpu.vector_store %arg3[%c0_4, %c0_5], %9 {strides = array<i32>} : memref<16x128xf32, #tpu.memory_space<vmem>>, vector<16x128xf32>,
    return
  }
  func.func @transform_0(%arg0: i32) -> (i32, i32) {
    %c0_i32 = arith.constant 0 : i32
    %c0_i32_0 = arith.constant 0 : i32
    return %arg0, %c0_i32 : i32, i32
  }
  func.func @transform_1(%arg0: i32) -> (i32, i32) {
    %c0_i32 = arith.constant 0 : i32
    %c0_i32_0 = arith.constant 0 : i32
    %c0_i32_1 = arith.constant 0 : i32
    return %c0_i32, %c0_i32_0 : i32, i32
  }
  func.func @transform_2(%arg0: i32) -> (i32, i32) {
    %c0_i32 = arith.constant 0 : i32
    %c0_i32_0 = arith.constant 0 : i32
    return %arg0, %c0_i32 : i32, i32
  }
}

</mosaic_0001>

<bundles_post_ra>
// kernel: tpu_custom_call.1
= control target key start
LH: loop header
LB: loop body
LE: loop exit
PB: predicated region body
PF: predicated region fallthrough
CT: control target
= control target key end

     0   :  { %7 = vsyncpa [#allocation3], 0  ;;  %s869_s0 = inlined_call_operand.vmem [shape: s32[16,1], index: 0, kind: input, shape index: {}]   ;;  %s870_s1 = inlined_call_operand.hbm [shape: f32[1024,128], index: 1, kind: input, shape index: {}]   ;;  %s871_s2 = inlined_call_operand.hbm [shape: f32[16,128], index: 2, kind: output, shape index: {}]  }
   0x1   :  { %8 = vsyncpa [#allocation4], 0  ;;  %s775_s9 = smov [#allocation2]  }
   0x2   :  { %s16_s10 = sshll.u32 %s775_s9, 4  ;;  %s17_s10 = int_to_ptr.vmem [resolvable:$true] %s16_s10 }
   0x3   :  { %s739_s11 = scalar_lea.vmem %s17_s10, 16384  ;;  %p744_p1 = scmp.lt.s32.totalorder %s17_s10, %s17_s10 }
   0x4   :  { %p740_p0 = scmp.ne.s32.totalorder %s17_s10, %s739_s11  ;;  %p745_p2 = scmp.lt.s32.totalorder %s739_s11, %s739_s11 }
   0x6   :  { %p746_p3 = por %p745_p2, %p744_p1 }
   0x8   :  { %p747_p4 = pnand %p746_p3, %p740_p0 }
   0xa   :  { %750 = shalt.err (!%p747_p4)
}
   0xb   :  { %s776_s12 = smov 128   ;;  %s777_s13 = smov 8  }
   0xc   :  { %22 = dma.hbm_to_vmem [thread:$0]  %s870_s1, 16384, %s17_s10, [#allocation3], %s776_s12, %s776_s12, %s777_s13  }
   0xd   :  { %771 = dma.done.wait [#allocation3], 16384  }
   0xe   :  { %772 = vsyncadd [#allocation3], 4294950912  ;;  %v778_v0 = vmov 0   ;;  %v26_v1 = vld [vmem:[%s869_s0] sm:$0xff]  ;;  %v27_v2 = vld [vmem:[%s869_s0 + $0x8] sm:$0xff]  ;;  %s780_s0 = smov [#allocation5]  }
   0xf   :  { %730 = vset.pattern.permute.xlu0 %v778_v0  ;;  %v122_v3 = vld [vmem:[#allocation2 + $0xf8] sm:$0xff]  ;;  %v121_v7 = vld [vmem:[#allocation2 + $0xf0] sm:$0xff]  ;;  %v120_v11 = vld [vmem:[#allocation2 + $0xe8] sm:$0xff]  ;;  %s528_s1 = sshll.u32 %s780_s0, 4  ;;  %s529_s1 = int_to_ptr.vmem [resolvable:$true] %s528_s1 }
  0x10   :  { %38 = vperm.xlu0 %730, %v26_v1   ;;  %572 = vmatprep.subr.mxu0 %v122_v3  ;;  %v154_v4 = vld [vmem:[#allocation2 + $0x1f8] sm:$0xff]  ;;  %v153_v8 = vld [vmem:[#allocation2 + $0x1f0] sm:$0xff]  ;;  %v152_v12 = vld [vmem:[#allocation2 + $0x1e8] sm:$0xff]  ;;  %s751_s20 = scalar_lea.vmem %s529_s1, 256  ;;  %p756_p6 = scmp.lt.s32.totalorder %s529_s1, %s529_s1 }
  0x11   :  { %v106_v5 = vld [vmem:[#allocation2 + $0x78] sm:$0xff]  ;;  %610 = vmatprep.subr.mxu1 %v154_v4  ;;  %v105_v9 = vld [vmem:[#allocation2 + $0x70] sm:$0xff]  ;;  %v104_v13 = vld [vmem:[#allocation2 + $0x68] sm:$0xff]  ;;  %p752_p5 = scmp.ne.s32.totalorder %s529_s1, %s751_s20  ;;  %p757_p7 = scmp.lt.s32.totalorder %s751_s20, %s751_s20 }
  0x12   :  { %v138_v6 = vld [vmem:[#allocation2 + $0x178] sm:$0xff]  ;;  %573 = vmatpush3.msra.mxu0 %v106_v5  ;;  %v137_v10 = vld [vmem:[#allocation2 + $0x170] sm:$0xff]  ;;  %v136_v14 = vld [vmem:[#allocation2 + $0x168] sm:$0xff]  ;;  %v28_v5 = vlaneseq }
  0x13   :  { %611 = vmatpush3.msra.mxu1 %v138_v6  ;;  %574 = vmatprep.subr.mxu0 %v121_v7  ;;  %v119_v15 = vld [vmem:[#allocation2 + $0xe0] sm:$0xff]  ;;  %v118_v19 = vld [vmem:[#allocation2 + $0xd8] sm:$0xff]  ;;  %v117_v23 = vld [vmem:[#allocation2 + $0xd0] sm:$0xff]  ;;  %p758_p8 = por %p757_p7, %p756_p6 }
  0x14   :  { %612 = vmatprep.subr.mxu1 %v153_v8  ;;  %575 = vmatpush3.msra.mxu0 %v105_v9  ;;  %v151_v16 = vld [vmem:[#allocation2 + $0x1e0] sm:$0xff]  ;;  %v150_v20 = vld [vmem:[#allocation2 + $0x1d8] sm:$0xff]  ;;  %v149_v24 = vld [vmem:[#allocation2 + $0x1d0] sm:$0xff]  ;;  %v808_v6 = vand.u32 127, %v28_v5 }
  0x15   :  { %41 = vperm.xlu0 %730, %v27_v2   ;;  %613 = vmatpush3.msra.mxu1 %v137_v10  ;;  %v103_v17 = vld [vmem:[#allocation2 + $0x60] sm:$0xff]  ;;  %v102_v21 = vld [vmem:[#allocation2 + $0x58] sm:$0xff]  ;;  %v101_v25 = vld [vmem:[#allocation2 + $0x50] sm:$0xff]  ;;  %p759_p9 = pnand %p758_p8, %p752_p5 }
  0x16   :  { %576 = vmatprep.subr.mxu0 %v120_v11  ;;  %614 = vmatprep.subr.mxu1 %v152_v12  ;;  %v135_v18 = vld [vmem:[#allocation2 + $0x160] sm:$0xff]  ;;  %v134_v22 = vld [vmem:[#allocation2 + $0x158] sm:$0xff]  ;;  %v133_v26 = vld [vmem:[#allocation2 + $0x150] sm:$0xff]  ;;  %v30_v7 = vadd.s32 128, %v808_v6  ;;  %v32_v8 = vadd.s32 384, %v808_v6  ;;  %v31_v9 = vadd.s32 256, %v808_v6 }
  0x17   :  { %577 = vmatpush3.msra.mxu0 %v104_v13  ;;  %615 = vmatpush3.msra.mxu1 %v136_v14  ;;  %v116_v27 = vld [vmem:[#allocation2 + $0xc8] sm:$0xff]  ;;  %v115_v31 = vld [vmem:[#allocation2 + $0xc0] sm:$0xff]  ;;  %v114_v35 = vld [vmem:[#allocation2 + $0xb8] sm:$0xff]  ;;  %v779_v13 = vmov 1.0  }
  0x18   :  { %578 = vmatprep.subr.mxu0 %v119_v15  ;;  %616 = vmatprep.subr.mxu1 %v151_v16  ;;  %v148_v28 = vld [vmem:[#allocation2 + $0x1c8] sm:$0xff]  ;;  %v147_v32 = vld [vmem:[#allocation2 + $0x1c0] sm:$0xff]  ;;  %v146_v36 = vld [vmem:[#allocation2 + $0x1b8] sm:$0xff] }
  0x19   :  { %579 = vmatpush3.msra.mxu0 %v103_v17  ;;  %617 = vmatpush3.msra.mxu1 %v135_v18  ;;  %v100_v29 = vld [vmem:[#allocation2 + $0x48] sm:$0xff]  ;;  %v99_v33 = vld [vmem:[#allocation2 + $0x40] sm:$0xff]  ;;  %v98_v37 = vld [vmem:[#allocation2 + $0x38] sm:$0xff] }
  0x1a   :  { %580 = vmatprep.subr.mxu0 %v118_v19  ;;  %618 = vmatprep.subr.mxu1 %v150_v20  ;;  %v132_v30 = vld [vmem:[#allocation2 + $0x148] sm:$0xff]  ;;  %v131_v34 = vld [vmem:[#allocation2 + $0x140] sm:$0xff]  ;;  %v130_v38 = vld [vmem:[#allocation2 + $0x138] sm:$0xff] }
  0x1b   :  { %581 = vmatpush3.msra.mxu0 %v102_v21  ;;  %619 = vmatpush3.msra.mxu1 %v134_v22  ;;  %v113_v39 = vld [vmem:[#allocation2 + $0xb0] sm:$0xff]  ;;  %v112_v43 = vld [vmem:[#allocation2 + $0xa8] sm:$0xff]  ;;  %v111_v47 = vld [vmem:[#allocation2 + $0xa0] sm:$0xff]  ;;  %v832_v21 = vadd.s32 640, %v808_v6 }
  0x1c   :  { %582 = vmatprep.subr.mxu0 %v117_v23  ;;  %620 = vmatprep.subr.mxu1 %v149_v24  ;;  %v145_v40 = vld [vmem:[#allocation2 + $0x1b0] sm:$0xff]  ;;  %v144_v44 = vld [vmem:[#allocation2 + $0x1a8] sm:$0xff]  ;;  %v143_v48 = vld [vmem:[#allocation2 + $0x1a0] sm:$0xff]  ;;  %v837_v24 = vadd.s32 896, %v808_v6 }
  0x1d   :  { %583 = vmatpush3.msra.mxu0 %v101_v25  ;;  %621 = vmatpush3.msra.mxu1 %v133_v26  ;;  %v97_v41 = vld [vmem:[#allocation2 + $0x30] sm:$0xff]  ;;  %v96_v45 = vld [vmem:[#allocation2 + $0x28] sm:$0xff]  ;;  %v95_v49 = vld [vmem:[#allocation2 + $0x20] sm:$0xff] }
  0x1e   :  { %584 = vmatprep.subr.mxu0 %v116_v27  ;;  %622 = vmatprep.subr.mxu1 %v148_v28  ;;  %v129_v42 = vld [vmem:[#allocation2 + $0x130] sm:$0xff]  ;;  %v128_v46 = vld [vmem:[#allocation2 + $0x128] sm:$0xff]  ;;  %v127_v50 = vld [vmem:[#allocation2 + $0x120] sm:$0xff] }
  0x1f   :  { %585 = vmatpush3.msra.mxu0 %v100_v29  ;;  %623 = vmatpush3.msra.mxu1 %v132_v30  ;;  %v110_v51 = vld [vmem:[#allocation2 + $0x98] sm:$0xff]  ;;  %v109_v55 = vld [vmem:[#allocation2 + $0x90] sm:$0xff]  ;;  %v108_v59 = vld [vmem:[#allocation2 + $0x88] sm:$0xff] }
  0x20   :  { %586 = vmatprep.subr.mxu0 %v115_v31  ;;  %624 = vmatprep.subr.mxu1 %v147_v32  ;;  %v142_v52 = vld [vmem:[#allocation2 + $0x198] sm:$0xff]  ;;  %v141_v56 = vld [vmem:[#allocation2 + $0x190] sm:$0xff]  ;;  %v140_v60 = vld [vmem:[#allocation2 + $0x188] sm:$0xff] }
  0x21   :  { %587 = vmatpush3.msra.mxu0 %v99_v33  ;;  %625 = vmatpush3.msra.mxu1 %v131_v34  ;;  %v94_v53 = vld [vmem:[#allocation2 + $0x18] sm:$0xff]  ;;  %v93_v57 = vld [vmem:[#allocation2 + $0x10] sm:$0xff]  ;;  %v92_v61 = vld [vmem:[#allocation2 + $0x8] sm:$0xff] }
  0x22   :  { %588 = vmatprep.subr.mxu0 %v114_v35  ;;  %626 = vmatprep.subr.mxu1 %v146_v36  ;;  %v126_v54 = vld [vmem:[#allocation2 + $0x118] sm:$0xff]  ;;  %v125_v58 = vld [vmem:[#allocation2 + $0x110] sm:$0xff]  ;;  %v124_v62 = vld [vmem:[#allocation2 + $0x108] sm:$0xff] }
  0x23   :  { %589 = vmatpush3.msra.mxu0 %v98_v37  ;;  %627 = vmatpush3.msra.mxu1 %v130_v38  ;;  %v107_v63 = vld [vmem:[#allocation2 + $0x80] sm:$0xff]  ;;  %v186_v3 = vld [vmem:[#allocation2 + $0x2f8] sm:$0xff]  ;;  %v185_v14 = vld [vmem:[#allocation2 + $0x2f0] sm:$0xff] }
  0x24   :  { %590 = vmatprep.subr.mxu0 %v113_v39  ;;  %628 = vmatprep.subr.mxu1 %v145_v40  ;;  %v139_v0 = vld [vmem:[#allocation2 + $0x180] sm:$0xff]  ;;  %v218_v4 = vld [vmem:[#allocation2 + $0x3f8] sm:$0xff]  ;;  %v217_v15 = vld [vmem:[#allocation2 + $0x3f0] sm:$0xff] }
  0x25   :  { %591 = vmatpush3.msra.mxu0 %v97_v41  ;;  %629 = vmatpush3.msra.mxu1 %v129_v42  ;;  %v91_v1 = vld [vmem:[#allocation2] sm:$0xff]  ;;  %v170_v11 = vld [vmem:[#allocation2 + $0x278] sm:$0xff]  ;;  %v169_v16 = vld [vmem:[#allocation2 + $0x270] sm:$0xff] }
  0x26   :  { %592 = vmatprep.subr.mxu0 %v112_v43  ;;  %630 = vmatprep.subr.mxu1 %v144_v44  ;;  %v123_v2 = vld [vmem:[#allocation2 + $0x100] sm:$0xff]  ;;  %v202_v12 = vld [vmem:[#allocation2 + $0x378] sm:$0xff]  ;;  %v201_v17 = vld [vmem:[#allocation2 + $0x370] sm:$0xff] }
  0x27   :  { %593 = vmatpush3.msra.mxu0 %v96_v45  ;;  %631 = vmatpush3.msra.mxu1 %v128_v46  ;;  %v184_v19 = vld [vmem:[#allocation2 + $0x2e8] sm:$0xff]  ;;  %v183_v25 = vld [vmem:[#allocation2 + $0x2e0] sm:$0xff]  ;;  %v182_v29 = vld [vmem:[#allocation2 + $0x2d8] sm:$0xff] }
  0x28   :  { %594 = vmatprep.subr.mxu0 %v111_v47  ;;  %632 = vmatprep.subr.mxu1 %v143_v48  ;;  %v216_v20 = vld [vmem:[#allocation2 + $0x3e8] sm:$0xff]  ;;  %v215_v26 = vld [vmem:[#allocation2 + $0x3e0] sm:$0xff]  ;;  %v214_v30 = vld [vmem:[#allocation2 + $0x3d8] sm:$0xff] }
  0x29   :  { %595 = vmatpush3.msra.mxu0 %v95_v49  ;;  %633 = vmatpush3.msra.mxu1 %v127_v50  ;;  %v168_v22 = vld [vmem:[#allocation2 + $0x268] sm:$0xff]  ;;  %v167_v27 = vld [vmem:[#allocation2 + $0x260] sm:$0xff]  ;;  %v166_v31 = vld [vmem:[#allocation2 + $0x258] sm:$0xff] }
  0x2a   :  { %596 = vmatprep.subr.mxu0 %v110_v51  ;;  %634 = vmatprep.subr.mxu1 %v142_v52  ;;  %v200_v23 = vld [vmem:[#allocation2 + $0x368] sm:$0xff]  ;;  %v199_v28 = vld [vmem:[#allocation2 + $0x360] sm:$0xff]  ;;  %v198_v32 = vld [vmem:[#allocation2 + $0x358] sm:$0xff] }
  0x2b   :  { %597 = vmatpush3.msra.mxu0 %v94_v53  ;;  %635 = vmatpush3.msra.mxu1 %v126_v54  ;;  %v181_v33 = vld [vmem:[#allocation2 + $0x2d0] sm:$0xff]  ;;  %v180_v37 = vld [vmem:[#allocation2 + $0x2c8] sm:$0xff]  ;;  %v179_v41 = vld [vmem:[#allocation2 + $0x2c0] sm:$0xff] }
  0x2c   :  { %598 = vmatprep.subr.mxu0 %v109_v55  ;;  %636 = vmatprep.subr.mxu1 %v141_v56  ;;  %v213_v34 = vld [vmem:[#allocation2 + $0x3d0] sm:$0xff]  ;;  %v212_v38 = vld [vmem:[#allocation2 + $0x3c8] sm:$0xff]  ;;  %v211_v42 = vld [vmem:[#allocation2 + $0x3c0] sm:$0xff] }
  0x2d   :  { %599 = vmatpush3.msra.mxu0 %v93_v57  ;;  %637 = vmatpush3.msra.mxu1 %v125_v58  ;;  %v165_v35 = vld [vmem:[#allocation2 + $0x250] sm:$0xff]  ;;  %v164_v39 = vld [vmem:[#allocation2 + $0x248] sm:$0xff]  ;;  %v163_v43 = vld [vmem:[#allocation2 + $0x240] sm:$0xff] }
  0x2e   :  { %600 = vmatprep.subr.mxu0 %v108_v59  ;;  %638 = vmatprep.subr.mxu1 %v140_v60  ;;  %v197_v36 = vld [vmem:[#allocation2 + $0x350] sm:$0xff]  ;;  %v196_v40 = vld [vmem:[#allocation2 + $0x348] sm:$0xff]  ;;  %v195_v44 = vld [vmem:[#allocation2 + $0x340] sm:$0xff] }
  0x2f   :  { %601 = vmatpush3.msra.mxu0 %v92_v61  ;;  %639 = vmatpush3.msra.mxu1 %v124_v62  ;;  %v178_v45 = vld [vmem:[#allocation2 + $0x2b8] sm:$0xff]  ;;  %v177_v49 = vld [vmem:[#allocation2 + $0x2b0] sm:$0xff]  ;;  %v176_v53 = vld [vmem:[#allocation2 + $0x2a8] sm:$0xff] }
  0x30   :  { %602 = vmatprep.subr.mxu0 %v107_v63  ;;  %640 = vmatprep.subr.mxu1 %v139_v0  ;;  %v210_v46 = vld [vmem:[#allocation2 + $0x3b8] sm:$0xff]  ;;  %v209_v50 = vld [vmem:[#allocation2 + $0x3b0] sm:$0xff]  ;;  %v208_v54 = vld [vmem:[#allocation2 + $0x3a8] sm:$0xff] }
  0x31   :  { %603 = vmatpush3.msra.mxu0 %v91_v1  ;;  %641 = vmatpush3.msra.mxu1 %v123_v2  ;;  %v162_v47 = vld [vmem:[#allocation2 + $0x238] sm:$0xff]  ;;  %v161_v51 = vld [vmem:[#allocation2 + $0x230] sm:$0xff]  ;;  %v160_v55 = vld [vmem:[#allocation2 + $0x228] sm:$0xff] }
  0x32   :  { %648 = vmatprep.subr.mxu0 %v186_v3  ;;  %686 = vmatprep.subr.mxu1 %v218_v4  ;;  %v194_v48 = vld [vmem:[#allocation2 + $0x338] sm:$0xff]  ;;  %v193_v52 = vld [vmem:[#allocation2 + $0x330] sm:$0xff]  ;;  %v192_v56 = vld [vmem:[#allocation2 + $0x328] sm:$0xff] }
  0x33   :  { %v175_v57 = vld [vmem:[#allocation2 + $0x2a0] sm:$0xff]  ;;  %v174_v61 = vld [vmem:[#allocation2 + $0x298] sm:$0xff]  ;;  %v173_v1 = vld [vmem:[#allocation2 + $0x290] sm:$0xff] }
  0x34   :  { %v207_v58 = vld [vmem:[#allocation2 + $0x3a0] sm:$0xff]  ;;  %v206_v62 = vld [vmem:[#allocation2 + $0x398] sm:$0xff]  ;;  %v205_v2 = vld [vmem:[#allocation2 + $0x390] sm:$0xff] }
  0x35   :  { %v159_v59 = vld [vmem:[#allocation2 + $0x220] sm:$0xff]  ;;  %v158_v63 = vld [vmem:[#allocation2 + $0x218] sm:$0xff]  ;;  %v157_v3 = vld [vmem:[#allocation2 + $0x210] sm:$0xff] }
  0x36   :  { %v191_v60 = vld [vmem:[#allocation2 + $0x320] sm:$0xff]  ;;  %v190_v0 = vld [vmem:[#allocation2 + $0x318] sm:$0xff]  ;;  %v189_v4 = vld [vmem:[#allocation2 + $0x310] sm:$0xff] }
  0x37   :  { %v172_v5 = vld [vmem:[#allocation2 + $0x288] sm:$0xff] }
  0x8b   :  { %v813_v10 = vpop.permute.xlu0 %38 }
  0x8c   :  { %vm44_vm0 = vcmp.eq.s32.totalorder %v30_v7, %v813_v10  ;;  %vm46_vm1 = vcmp.eq.s32.totalorder %v32_v8, %v813_v10  ;;  %vm43_vm2 = vcmp.eq.s32.totalorder %v808_v6, %v813_v10  ;;  %vm45_vm3 = vcmp.eq.s32.totalorder %v31_v9, %v813_v10 }
  0x8d   :  { %556 = vmatprep.mubr.msk.f32.mxu0 %vm44_vm0, %v779_v13  ;;  %560 = vmatprep.mubr.msk.f32.mxu1 %vm46_vm1, %v779_v13  ;;  %vm48_vm8 = vcmp.eq.s32.totalorder %v832_v21, %v813_v10  ;;  %vm50_vm9 = vcmp.eq.s32.totalorder %v837_v24, %v813_v10 }
  0x8e   :  { %557 = vmatmul.mubr.msk.f32.vlgmr.msra.gmra.mxu0 %vm43_vm2, %v779_v13  ;;  %561 = vmatmul.mubr.msk.f32.vlgmr.msra.gmra.mxu1 %vm45_vm3, %v779_v13 }
  0x8f   :  { %649 = vmatpush3.msra.mxu0 %v170_v11  ;;  %687 = vmatpush3.msra.mxu1 %v202_v12  ;;  %v171_v11 = vld [vmem:[#allocation2 + $0x280] sm:$0xff] }
  0x90   :  { %v824_v18 = vpop.permute.xlu0 %41  ;;  %650 = vmatprep.subr.mxu0 %v185_v14  ;;  %688 = vmatprep.subr.mxu1 %v217_v15  ;;  %v203_v12 = vld [vmem:[#allocation2 + $0x380] sm:$0xff]  ;;  %v33_v14 = vadd.s32 512, %v808_v6  ;;  %v35_v15 = vadd.s32 768, %v808_v6 }
  0x91   :  { %vm52_vm4 = vcmp.eq.s32.totalorder %v30_v7, %v824_v18  ;;  %vm54_vm5 = vcmp.eq.s32.totalorder %v32_v8, %v824_v18  ;;  %651 = vmatpush3.msra.mxu0 %v169_v16  ;;  %689 = vmatpush3.msra.mxu1 %v201_v17  ;;  %vm51_vm6 = vcmp.eq.s32.totalorder %v808_v6, %v824_v18  ;;  %v204_v7 = vld [vmem:[#allocation2 + $0x388] sm:$0xff]  ;;  %v155_v16 = vld [vmem:[#allocation2 + $0x200] sm:$0xff] }
  0x92   :  { %vm53_vm7 = vcmp.eq.s32.totalorder %v31_v9, %v824_v18  ;;  %558 = vmatprep.mubr.msk.f32.mxu0 %vm52_vm4, %v779_v13  ;;  %562 = vmatprep.mubr.msk.f32.mxu1 %vm54_vm5, %v779_v13  ;;  %v156_v8 = vld [vmem:[#allocation2 + $0x208] sm:$0xff]  ;;  %v187_v17 = vld [vmem:[#allocation2 + $0x300] sm:$0xff]  ;;  %vm47_vm10 = vcmp.eq.s32.totalorder %v33_v14, %v813_v10  ;;  %vm49_vm11 = vcmp.eq.s32.totalorder %v35_v15, %v813_v10 }
  0x93   :  { %652 = vmatprep.subr.mxu0 %v184_v19  ;;  %690 = vmatprep.subr.mxu1 %v216_v20  ;;  %v188_v9 = vld [vmem:[#allocation2 + $0x308] sm:$0xff]  ;;  %vm56_vm12 = vcmp.eq.s32.totalorder %v832_v21, %v824_v18  ;;  %vm58_vm13 = vcmp.eq.s32.totalorder %v837_v24, %v824_v18  ;;  %vm55_vm14 = vcmp.eq.s32.totalorder %v33_v14, %v824_v18 }
  0x94   :  { %559 = vmatmul.mubr.msk.f32.gmra.mxu0 %vm51_vm6, %v779_v13  ;;  %563 = vmatmul.mubr.msk.f32.gmra.mxu1 %vm53_vm7, %v779_v13  ;;  %vm57_vm15 = vcmp.eq.s32.totalorder %v35_v15, %v824_v18 }
  0x95   :  { %653 = vmatpush3.msra.mxu0 %v168_v22  ;;  %691 = vmatpush3.msra.mxu1 %v200_v23 }
  0x96   :  { %654 = vmatprep.subr.mxu0 %v183_v25  ;;  %564 = vmatprep.mubr.msk.f32.mxu0 %vm48_vm8, %v779_v13 }
  0x97   :  { %692 = vmatprep.subr.mxu1 %v215_v26  ;;  %568 = vmatprep.mubr.msk.f32.mxu1 %vm50_vm9, %v779_v13 }
  0x98   :  { %655 = vmatpush3.msra.mxu0 %v167_v27  ;;  %693 = vmatpush3.msra.mxu1 %v199_v28 }
  0x99   :  { %656 = vmatprep.subr.mxu0 %v182_v29  ;;  %694 = vmatprep.subr.mxu1 %v214_v30 }
  0x9a   :  { %657 = vmatpush3.msra.mxu0 %v166_v31  ;;  %695 = vmatpush3.msra.mxu1 %v198_v32 }
  0x9b   :  { %658 = vmatprep.subr.mxu0 %v181_v33  ;;  %696 = vmatprep.subr.mxu1 %v213_v34 }
  0x9c   :  { %659 = vmatpush3.msra.mxu0 %v165_v35  ;;  %697 = vmatpush3.msra.mxu1 %v197_v36 }
  0x9d   :  { %660 = vmatprep.subr.mxu0 %v180_v37  ;;  %698 = vmatprep.subr.mxu1 %v212_v38 }
  0x9e   :  { %661 = vmatpush3.msra.mxu0 %v164_v39  ;;  %699 = vmatpush3.msra.mxu1 %v196_v40 }
  0x9f   :  { %662 = vmatprep.subr.mxu0 %v179_v41  ;;  %700 = vmatprep.subr.mxu1 %v211_v42 }
  0xa0   :  { %663 = vmatpush3.msra.mxu0 %v163_v43  ;;  %701 = vmatpush3.msra.mxu1 %v195_v44 }
  0xa1   :  { %664 = vmatprep.subr.mxu0 %v178_v45  ;;  %702 = vmatprep.subr.mxu1 %v210_v46 }
  0xa2   :  { %665 = vmatpush3.msra.mxu0 %v162_v47  ;;  %703 = vmatpush3.msra.mxu1 %v194_v48 }
  0xa3   :  { %666 = vmatprep.subr.mxu0 %v177_v49  ;;  %704 = vmatprep.subr.mxu1 %v209_v50 }
  0xa4   :  { %667 = vmatpush3.msra.mxu0 %v161_v51  ;;  %705 = vmatpush3.msra.mxu1 %v193_v52 }
  0xa5   :  { %668 = vmatprep.subr.mxu0 %v176_v53  ;;  %706 = vmatprep.subr.mxu1 %v208_v54 }
  0xa6   :  { %669 = vmatpush3.msra.mxu0 %v160_v55  ;;  %707 = vmatpush3.msra.mxu1 %v192_v56 }
  0xa7   :  { %670 = vmatprep.subr.mxu0 %v175_v57  ;;  %708 = vmatprep.subr.mxu1 %v207_v58 }
  0xa8   :  { %671 = vmatpush3.msra.mxu0 %v159_v59  ;;  %709 = vmatpush3.msra.mxu1 %v191_v60 }
  0xa9   :  { %672 = vmatprep.subr.mxu0 %v174_v61  ;;  %710 = vmatprep.subr.mxu1 %v206_v62 }
  0xaa   :  { %673 = vmatpush3.msra.mxu0 %v158_v63  ;;  %711 = vmatpush3.msra.mxu1 %v190_v0 }
  0xab   :  { %674 = vmatprep.subr.mxu0 %v173_v1  ;;  %712 = vmatprep.subr.mxu1 %v205_v2 }
  0xac   :  { %675 = vmatpush3.msra.mxu0 %v157_v3  ;;  %713 = vmatpush3.msra.mxu1 %v189_v4 }
  0xad   :  { %676 = vmatprep.subr.mxu0 %v172_v5  ;;  %714 = vmatprep.subr.mxu1 %v204_v7 }
  0xae   :  { %677 = vmatpush3.msra.mxu0 %v156_v8  ;;  %715 = vmatpush3.msra.mxu1 %v188_v9 }
  0xaf   :  { %678 = vmatprep.subr.mxu0 %v171_v11  ;;  %716 = vmatprep.subr.mxu1 %v203_v12 }
  0xb0   :  { %679 = vmatpush3.msra.mxu0 %v155_v16  ;;  %717 = vmatpush3.msra.mxu1 %v187_v17 }
  0xb1   :  { %565 = vmatmul.mubr.msk.f32.vlgmr.msra.gmra.mxu0 %vm47_vm10, %v779_v13  ;;  %569 = vmatmul.mubr.msk.f32.vlgmr.msra.gmra.mxu1 %vm49_vm11, %v779_v13 }
  0xb2   :  { %566 = vmatprep.mubr.msk.f32.mxu0 %vm56_vm12, %v779_v13  ;;  %570 = vmatprep.mubr.msk.f32.mxu1 %vm58_vm13, %v779_v13 }
  0xb5   :  { %567 = vmatmul.mubr.msk.f32.gmra.mxu0 %vm55_vm14, %v779_v13  ;;  %571 = vmatmul.mubr.msk.f32.gmra.mxu1 %vm57_vm15, %v779_v13 }
 0x14e   :  { %v604_v6 = vpop.f32.mrf.mxu0  ;;  %v642_v10 = vpop.f32.mrf.mxu1 }
 0x150   :  { %v605_v19 = vpop.f32.mrf.mxu0  ;;  %v643_v20 = vpop.f32.mrf.mxu1 }
 0x151   :  { %v606_v25 = vadd.f32 %v605_v19, %v604_v6  ;;  %v644_v26 = vadd.f32 %v643_v20, %v642_v10 }
 0x153   :  { %v361_v31 = vadd.f32 %v644_v26, %v606_v25 }
 0x154   :  { %v607_v21 = vpop.f32.mrf.mxu0  ;;  %v645_v22 = vpop.f32.mrf.mxu1 }
 0x156   :  { %v608_v23 = vpop.f32.mrf.mxu0  ;;  %v646_v24 = vpop.f32.mrf.mxu1 }
 0x157   :  { %v609_v18 = vadd.f32 %v608_v23, %v607_v21  ;;  %v647_v32 = vadd.f32 %v646_v24, %v645_v22 }
 0x159   :  { %v366_v39 = vadd.f32 %v647_v32, %v609_v18 }
 0x171   :  { %v680_v27 = vpop.f32.mrf.mxu0  ;;  %v718_v28 = vpop.f32.mrf.mxu1 }
 0x173   :  { %v681_v29 = vpop.f32.mrf.mxu0  ;;  %v719_v30 = vpop.f32.mrf.mxu1 }
 0x174   :  { %v682_v33 = vadd.f32 %v681_v29, %v680_v27  ;;  %v720_v36 = vadd.f32 %v719_v30, %v718_v28 }
 0x175   :  { %v683_v34 = vpop.f32.mrf.mxu0  ;;  %v721_v13 = vpop.f32.mrf.mxu1 }
 0x176   :  { %v436_v35 = vadd.f32 %v682_v33, %v361_v31 }
 0x177   :  { %v684_v37 = vpop.f32.mrf.mxu0  ;;  %v722_v38 = vpop.f32.mrf.mxu1 }
 0x178   :  { %v511_v40 = vadd.f32 %v720_v36, %v436_v35  ;;  %v685_v41 = vadd.f32 %v684_v37, %v683_v34  ;;  %v723_v44 = vadd.f32 %v722_v38, %v721_v13 }
 0x17a   :  { %v519_v42 = vmul.f32 5.656854, %v511_v40  ;;  %v441_v43 = vadd.f32 %v685_v41, %v366_v39 }
 0x17c   :  { %521 = vst [vmem:[#allocation5] sm:$0xff] %v519_v42  ;;  %v516_v45 = vadd.f32 %v723_v44, %v441_v43 }
 0x17e   :  { %v520_v46 = vmul.f32 5.656854, %v516_v45 }
 0x180   :  { %522 = vst [vmem:[#allocation5 + $0x8] sm:$0xff] %v520_v46 }
 0x181   :  { %762 = shalt.err (!%p759_p9)
}
 0x182   :  { %534 = dma.vmem_to_hbm [thread:$0]  %s529_s1, 256, %s871_s2, [#allocation4], %s776_s12, %s776_s12, %s777_s13  }
 0x183   :  { %773 = dma.done.wait [#allocation4], 256  }
 0x184   :  { %774 = vsyncadd [#allocation4], 4294967040 }
 0x185   :  { %538 = vsyncpa [#allocation3], 1 }
 0x186   :  { %539 = vsyncpa [#allocation4], 1 }

</bundles_post_ra>
